<compile_context>
chip_gen: v7x
topology: tpu7x:2x2x1
jax: 0.10.0
libtpu: 0.0.40
codegen_flags: <defaults>
</compile_context>

<pallas_src>
import functools
import math

import jax
import jax.numpy as jnp
from jax.experimental import pallas as pl
from jax.experimental.pallas import tpu as pltpu

_LANES = 128
_SUB = 8


def _fold(v):
    """(tr, 128) -> (8, 128) partial sums via pure vreg adds (no XLU work)."""
    return jnp.sum(v.reshape(-1, _SUB, _LANES), axis=0)


def _loss_kernel(x_ref, t_ref, o_ref, *, tr, rows, tiles_per_core, ragged):
    c = pl.program_id(0)   # core ("parallel")
    i = pl.program_id(1)   # tile within core ("arbitrary" reduction axis)

    @pl.when(i == 0)
    def _init():
        o_ref[...] = jnp.zeros_like(o_ref)

    x = x_ref[...].astype(jnp.float32)
    t = t_ref[...].astype(jnp.float32)

    def accumulate(apply_row_mask):
        # Numerically stable BCE-with-logits (matches nn.BCEWithLogitsLoss):
        #   max(x,0) - x*t + log(1 + exp(-|x|))
        e = jnp.exp(-jnp.abs(x))
        inv = 1.0 / (1.0 + e)                     # one shared reciprocal
        bce = jnp.maximum(x, 0.0) - x * t + jnp.log(1.0 + e)
        # Numerically stable sigmoid reusing e and inv.
        s = jnp.where(x >= 0.0, 1.0, e) * inv
        tt = t
        if apply_row_mask:
            blk = c * tiles_per_core + i          # logical (unclamped) block id
            row = blk * tr + jax.lax.broadcasted_iota(jnp.int32, x.shape, 0)
            valid = row < rows
            zero = jnp.zeros_like(x)
            bce = jnp.where(valid, bce, zero)
            s = jnp.where(valid, s, zero)
            tt = jnp.where(valid, tt, zero)
        o_ref[0 * _SUB:1 * _SUB, :] += _fold(bce)      # sum of BCE terms
        o_ref[1 * _SUB:2 * _SUB, :] += _fold(s)        # sum of sigmoid(x)
        o_ref[2 * _SUB:3 * _SUB, :] += _fold(tt)       # sum of target
        o_ref[3 * _SUB:4 * _SUB, :] += _fold(s * tt)   # intersection

    if ragged:
        blk = c * tiles_per_core + i
        needs_mask = (blk + 1) * tr > rows            # only the tail block(s)

        @pl.when(needs_mask)
        def _tail():
            accumulate(True)

        @pl.when(jnp.logical_not(needs_mask))
        def _interior():
            accumulate(False)
    else:
        accumulate(False)


def combined_bce_dice_loss(logits, target, smooth=0.1, tile_rows=2048):
    """BCEWithLogitsLoss(logits, target) + DiceLoss(logits, target)."""
    assert logits.shape == target.shape, (logits.shape, target.shape)
    numel = math.prod(logits.shape)

    x = logits.reshape(-1)
    t = target.reshape(-1)

    lane_pad = (-numel) % _LANES
    if lane_pad:
        # Rare path (numel not a multiple of 128): pad by <128 sentinel
        # elements whose BCE / sigmoid / target / product contributions are
        # exactly zero.  Lane-divisible shapes (the common segmentation case)
        # take the zero-copy path.
        x = jnp.pad(x, (0, lane_pad), constant_values=-1e9)
        t = jnp.pad(t, (0, lane_pad), constant_values=0)
    rows = (numel + lane_pad) // _LANES
    x2 = x.reshape(rows, _LANES)
    t2 = t.reshape(rows, _LANES)

    # Big row-blocks amortize the ~0.35 us/step overhead; multiple of 32 keeps
    # bf16 / int8 sublane tiling happy.
    tr = max(32, min(int(tile_rows), rows))
    tr = -(-tr // 32) * 32
    num_tiles = -(-rows // tr)
    num_cores = 2 if num_tiles >= 2 else 1            # v7x: 2 TCs; v5e/v6e: no-op
    tiles_per_core = -(-num_tiles // num_cores)
    ragged = (num_cores * tiles_per_core * tr) != rows

    if num_cores * tiles_per_core > num_tiles:
        # Phantom trailing block(s) on the last core: clamp the DMA to the
        # last real block; its contribution is fully masked out in-kernel.
        def in_idx(c, i):
            return (jnp.minimum(c * tiles_per_core + i, num_tiles - 1), 0)
    else:
        def in_idx(c, i):
            return (c * tiles_per_core + i, 0)

    kernel = functools.partial(
        _loss_kernel, tr=tr, rows=rows, tiles_per_core=tiles_per_core,
        ragged=ragged)

    in_bytes = tr * _LANES * (x2.dtype.itemsize + t2.dtype.itemsize)
    vmem_limit = int(min(64 << 20, max(32 << 20, 6 * in_bytes)))

    cost = pl.CostEstimate(
        flops=12 * numel,
        transcendentals=3 * numel,
        bytes_accessed=rows * _LANES * (x2.dtype.itemsize + t2.dtype.itemsize)
        + num_cores * 4 * _SUB * _LANES * 4,
    )

    partials = pl.pallas_call(
        kernel,
        out_shape=jax.ShapeDtypeStruct((num_cores * 4 * _SUB, _LANES),
                                       jnp.float32),
        grid=(num_cores, tiles_per_core),
        in_specs=[pl.BlockSpec((tr, _LANES), in_idx),
                  pl.BlockSpec((tr, _LANES), in_idx)],
        out_specs=pl.BlockSpec((4 * _SUB, _LANES), lambda c, i: (c, 0)),
        compiler_params=pltpu.CompilerParams(
            dimension_semantics=("parallel", "arbitrary"),
            vmem_limit_bytes=vmem_limit),
        cost_estimate=cost,
    )(x2, t2)

    # <=32 KiB of glue: 8->1 sublane + lane reduce and the scalar loss math.
    sums = jnp.sum(partials.reshape(num_cores, 4, _SUB, _LANES), axis=(0, 2, 3))
    bce_sum, sig_sum, tgt_sum, inter = sums[0], sums[1], sums[2], sums[3]

    bce = bce_sum / numel
    dice = 1.0 - (2.0 * inter + smooth) / (sig_sum + tgt_sum + smooth)
    return bce + dice


# ----------------------------------------------------------------------------
# Pure-JAX reference (mirrors the PyTorch module).
# ----------------------------------------------------------------------------
def ref_loss(logits, target, smooth=0.1):
    x = logits.reshape(-1).astype(jnp.float32)
    t = target.reshape(-1).astype(jnp.float32)
    bce = jnp.mean(jnp.maximum(x, 0.0) - x * t
                   + jnp.log(1.0 + jnp.exp(-jnp.abs(x))))
    s = jax.nn.sigmoid(x)
    inter = jnp.sum(s * t)
    dice = 1.0 - (2.0 * inter + smooth) / (jnp.sum(s) + jnp.sum(t) + smooth)
    return bce + dice


if __name__ == "__main__":
    key = jax.random.PRNGKey(0)
    k1, k2, k3, k4, k5, k6 = jax.random.split(key, 6)

    # Case 1: nominal small shape (lane-divisible, single tile, single core).
    logits = jax.random.normal(k1, (2, 4, 16, 16), jnp.float32)
    target = jax.random.bernoulli(k2, 0.5, (2, 4, 16, 16)).astype(jnp.float32)
    out = jax.block_until_ready(combined_bce_dice_loss(logits, target))
    ref = jax.block_until_ready(ref_loss(logits, target))
    assert out.shape == (), out.shape
    assert jnp.allclose(out, ref, atol=1e-4, rtol=1e-4), (float(out), float(ref))

    # Case 2: zero-copy path (numel % 128 == 0) with multi-tile grid and an
    # odd tile count: exercises the two-core split, the clamped phantom block
    # and the in-kernel masked ragged tail.
    logits2 = jax.random.normal(k3, (2, 4, 36, 40), jnp.float32)
    target2 = jax.random.bernoulli(k4, 0.3, (2, 4, 36, 40)).astype(jnp.float32)
    out2 = jax.block_until_ready(
        combined_bce_dice_loss(logits2, target2, tile_rows=32))
    ref2 = jax.block_until_ready(ref_loss(logits2, target2))
    assert jnp.allclose(out2, ref2, atol=1e-4, rtol=1e-4), (float(out2),
                                                            float(ref2))

    # Case 3: ragged numel (sentinel lane padding) + native bf16 logits read
    # straight from HBM at half width.
    logits3 = jax.random.normal(k5, (3, 5, 33, 29), jnp.bfloat16)
    target3 = jax.random.bernoulli(k6, 0.4, (3, 5, 33, 29)).astype(jnp.float32)
    out3 = jax.block_until_ready(
        combined_bce_dice_loss(logits3, target3, tile_rows=32))
    ref3 = jax.block_until_ready(ref_loss(logits3, target3))
    assert jnp.allclose(out3, ref3, atol=1e-3, rtol=1e-3), (float(out3),
                                                            float(ref3))

    print("KERNEL_OK")
</pallas_src>

<mosaic_0001>
module attributes {stable_mosaic.version = 11 : i64} {
  func.func @_loss_kernel(%arg0: i32, %arg1: i32, %arg2: memref<32x128xf32, #tpu.memory_space<vmem>>, %arg3: memref<32x128xf32, #tpu.memory_space<vmem>>, %arg4: memref<32x128xf32, #tpu.memory_space<vmem>>) attributes {dimension_semantics = [#tpu.dimension_semantics<parallel>, #tpu.dimension_semantics<arbitrary>], iteration_bounds = array<i64: 1, 1>, scalar_prefetch = 0 : i64, scratch_operands = 0 : i64, tpu.core_type = #tpu.core_type<tc>, window_params = [{transform_indices = @transform_0, window_bounds = array<i64: 32, 128>}, {transform_indices = @transform_1, window_bounds = array<i64: 32, 128>}, {transform_indices = @transform_2, window_bounds = array<i64: 32, 128>}]} {
    %c0_i32 = arith.constant 0 : i32
    %0 = arith.cmpi eq, %arg1, %c0_i32 : i32
    %1 = arith.extui %0 : i1 to i32
    %c0_i32_0 = arith.constant 0 : i32
    %2 = arith.cmpi ne, %1, %c0_i32_0 : i32
    scf.if %2 {
      %cst = arith.constant 0.000000e+00 : f32
      %15 = vector.broadcast %cst : f32 to vector<32x128xf32>
      %c0_7 = arith.constant 0 : index
      %c0_8 = arith.constant 0 : index
      %16 = vector.load %arg4[%c0_7, %c0_8] : memref<32x128xf32, #tpu.memory_space<vmem>>, vector<32x128xf32>
      tpu.vector_store %arg4[%c0_7, %c0_8], %15 {strides = array<i32>} : memref<32x128xf32, #tpu.memory_space<vmem>>, vector<32x128xf32>,
    } else {
    }
    %c0 = arith.constant 0 : index
    %c0_1 = arith.constant 0 : index
    %3 = vector.load %arg2[%c0, %c0_1] : memref<32x128xf32, #tpu.memory_space<vmem>>, vector<32x128xf32>
    %c0_2 = arith.constant 0 : index
    %c0_3 = arith.constant 0 : index
    %4 = vector.load %arg3[%c0_2, %c0_3] : memref<32x128xf32, #tpu.memory_space<vmem>>, vector<32x128xf32>
    %c1_i32 = arith.constant 1 : i32
    %5 = arith.muli %arg0, %c1_i32 : i32
    %6 = arith.addi %5, %arg1 : i32
    %c1_i32_4 = arith.constant 1 : i32
    %7 = arith.addi %6, %c1_i32_4 : i32
    %c32_i32 = arith.constant 32 : i32
    %8 = arith.muli %7, %c32_i32 : i32
    %c16_i32 = arith.constant 16 : i32
    %9 = arith.cmpi sgt, %8, %c16_i32 : i32
    %10 = arith.extui %9 : i1 to i32
    %c0_i32_5 = arith.constant 0 : i32
    %11 = arith.cmpi ne, %10, %c0_i32_5 : i32
    scf.if %11 {
      %15 = math.absf %3 : vector<32x128xf32>
      %cst = arith.constant 0.000000e+00 : f32
      %16 = vector.broadcast %cst : f32 to vector<32x128xf32>
      %17 = arith.subf %16, %15 : vector<32x128xf32>
      %18 = math.exp %17 : vector<32x128xf32>
      %cst_7 = arith.constant 1.000000e+00 : f32
      %19 = vector.broadcast %cst_7 : f32 to vector<32x128xf32>
      %20 = arith.addf %19, %18 : vector<32x128xf32>
      %cst_8 = arith.constant 1.000000e+00 : f32
      %21 = vector.broadcast %cst_8 : f32 to vector<32x128xf32>
      %22 = arith.divf %21, %20 : vector<32x128xf32>
      %cst_9 = arith.constant 0.000000e+00 : f32
      %23 = vector.broadcast %cst_9 : f32 to vector<32x128xf32>
      %24 = arith.maximumf %3, %23 : vector<32x128xf32>
      %25 = arith.mulf %3, %4 : vector<32x128xf32>
      %26 = arith.subf %24, %25 : vector<32x128xf32>
      %cst_10 = arith.constant 1.000000e+00 : f32
      %27 = vector.broadcast %cst_10 : f32 to vector<32x128xf32>
      %28 = arith.addf %27, %18 : vector<32x128xf32>
      %29 = math.log %28 : vector<32x128xf32>
      %30 = arith.addf %26, %29 : vector<32x128xf32>
      %cst_11 = arith.constant 0.000000e+00 : f32
      %31 = vector.broadcast %cst_11 : f32 to vector<32x128xf32>
      %32 = arith.cmpf oge, %3, %31 : vector<32x128xf32>
      %cst_12 = arith.constant 1.000000e+00 : f32
      %33 = vector.broadcast %cst_12 : f32 to vector<32x128xf32>
      %34 = arith.select %32, %33, %18 : vector<32x128xi1>, vector<32x128xf32>
      %35 = arith.mulf %34, %22 : vector<32x128xf32>
      %c1_i32_13 = arith.constant 1 : i32
      %36 = arith.muli %arg0, %c1_i32_13 : i32
      %37 = arith.addi %36, %arg1 : i32
      %c32_i32_14 = arith.constant 32 : i32
      %38 = arith.muli %37, %c32_i32_14 : i32
      %39 = tpu.iota {dimensions = array<i32: 0>} : vector<32x128xi32>
      %40 = vector.broadcast %38 : i32 to vector<32x128xi32>
      %41 = arith.addi %40, %39 : vector<32x128xi32>
      %c16_i32_15 = arith.constant 16 : i32
      %42 = vector.broadcast %c16_i32_15 : i32 to vector<32x128xi32>
      %43 = arith.cmpi slt, %41, %42 : vector<32x128xi32>
      %cst_16 = arith.constant 0.000000e+00 : f32
      %44 = vector.broadcast %cst_16 : f32 to vector<32x128xf32>
      %45 = arith.select %43, %30, %44 : vector<32x128xi1>, vector<32x128xf32>
      %46 = arith.select %43, %35, %44 : vector<32x128xi1>, vector<32x128xf32>
      %47 = arith.select %43, %4, %44 : vector<32x128xi1>, vector<32x128xf32>
      %c0_17 = arith.constant 0 : index
      %c0_18 = arith.constant 0 : index
      %48 = vector.load %arg4[%c0_17, %c0_18] : memref<32x128xf32, #tpu.memory_space<vmem>>, vector<8x128xf32>
      %49 = vector.shape_cast %45 : vector<32x128xf32> to vector<4x8x128xf32>
      %cst_19 = arith.constant dense<0.000000e+00> : vector<8x128xf32>
      %50 = vector.multi_reduction <add>, %49, %cst_19 [0] : vector<4x8x128xf32> to vector<8x128xf32>
      %51 = arith.addf %48, %50 : vector<8x128xf32>
      %c0_20 = arith.constant 0 : index
      %c0_21 = arith.constant 0 : index
      %52 = vector.load %arg4[%c0_20, %c0_21] : memref<32x128xf32, #tpu.memory_space<vmem>>, vector<8x128xf32>
      tpu.vector_store %arg4[%c0_20, %c0_21], %51 {strides = array<i32>} : memref<32x128xf32, #tpu.memory_space<vmem>>, vector<8x128xf32>,
      %c8 = arith.constant 8 : index
      %c0_22 = arith.constant 0 : index
      %53 = vector.load %arg4[%c8, %c0_22] : memref<32x128xf32, #tpu.memory_space<vmem>>, vector<8x128xf32>
      %54 = vector.shape_cast %46 : vector<32x128xf32> to vector<4x8x128xf32>
      %cst_23 = arith.constant dense<0.000000e+00> : vector<8x128xf32>
      %55 = vector.multi_reduction <add>, %54, %cst_23 [0] : vector<4x8x128xf32> to vector<8x128xf32>
      %56 = arith.addf %53, %55 : vector<8x128xf32>
      %c8_24 = arith.constant 8 : index
      %c0_25 = arith.constant 0 : index
      %57 = vector.load %arg4[%c8_24, %c0_25] : memref<32x128xf32, #tpu.memory_space<vmem>>, vector<8x128xf32>
      tpu.vector_store %arg4[%c8_24, %c0_25], %56 {strides = array<i32>} : memref<32x128xf32, #tpu.memory_space<vmem>>, vector<8x128xf32>,
      %c16 = arith.constant 16 : index
      %c0_26 = arith.constant 0 : index
      %58 = vector.load %arg4[%c16, %c0_26] : memref<32x128xf32, #tpu.memory_space<vmem>>, vector<8x128xf32>
      %59 = vector.shape_cast %47 : vector<32x128xf32> to vector<4x8x128xf32>
      %cst_27 = arith.constant dense<0.000000e+00> : vector<8x128xf32>
      %60 = vector.multi_reduction <add>, %59, %cst_27 [0] : vector<4x8x128xf32> to vector<8x128xf32>
      %61 = arith.addf %58, %60 : vector<8x128xf32>
      %c16_28 = arith.constant 16 : index
      %c0_29 = arith.constant 0 : index
      %62 = vector.load %arg4[%c16_28, %c0_29] : memref<32x128xf32, #tpu.memory_space<vmem>>, vector<8x128xf32>
      tpu.vector_store %arg4[%c16_28, %c0_29], %61 {strides = array<i32>} : memref<32x128xf32, #tpu.memory_space<vmem>>, vector<8x128xf32>,
      %c24 = arith.constant 24 : index
      %c0_30 = arith.constant 0 : index
      %63 = vector.load %arg4[%c24, %c0_30] : memref<32x128xf32, #tpu.memory_space<vmem>>, vector<8x128xf32>
      %64 = arith.mulf %46, %47 : vector<32x128xf32>
      %65 = vector.shape_cast %64 : vector<32x128xf32> to vector<4x8x128xf32>
      %cst_31 = arith.constant dense<0.000000e+00> : vector<8x128xf32>
      %66 = vector.multi_reduction <add>, %65, %cst_31 [0] : vector<4x8x128xf32> to vector<8x128xf32>
      %67 = arith.addf %63, %66 : vector<8x128xf32>
      %c24_32 = arith.constant 24 : index
      %c0_33 = arith.constant 0 : index
      %68 = vector.load %arg4[%c24_32, %c0_33] : memref<32x128xf32, #tpu.memory_space<vmem>>, vector<8x128xf32>
      tpu.vector_store %arg4[%c24_32, %c0_33], %67 {strides = array<i32>} : memref<32x128xf32, #tpu.memory_space<vmem>>, vector<8x128xf32>,
    } else {
    }
    %true = arith.constant true
    %12 = arith.xori %9, %true : i1
    %13 = arith.extui %12 : i1 to i32
    %c0_i32_6 = arith.constant 0 : i32
    %14 = arith.cmpi ne, %13, %c0_i32_6 : i32
    scf.if %14 {
      %15 = math.absf %3 : vector<32x128xf32>
      %cst = arith.constant 0.000000e+00 : f32
      %16 = vector.broadcast %cst : f32 to vector<32x128xf32>
      %17 = arith.subf %16, %15 : vector<32x128xf32>
      %18 = math.exp %17 : vector<32x128xf32>
      %cst_7 = arith.constant 1.000000e+00 : f32
      %19 = vector.broadcast %cst_7 : f32 to vector<32x128xf32>
      %20 = arith.addf %19, %18 : vector<32x128xf32>
      %cst_8 = arith.constant 1.000000e+00 : f32
      %21 = vector.broadcast %cst_8 : f32 to vector<32x128xf32>
      %22 = arith.divf %21, %20 : vector<32x128xf32>
      %cst_9 = arith.constant 0.000000e+00 : f32
      %23 = vector.broadcast %cst_9 : f32 to vector<32x128xf32>
      %24 = arith.maximumf %3, %23 : vector<32x128xf32>
      %25 = arith.mulf %3, %4 : vector<32x128xf32>
      %26 = arith.subf %24, %25 : vector<32x128xf32>
      %cst_10 = arith.constant 1.000000e+00 : f32
      %27 = vector.broadcast %cst_10 : f32 to vector<32x128xf32>
      %28 = arith.addf %27, %18 : vector<32x128xf32>
      %29 = math.log %28 : vector<32x128xf32>
      %30 = arith.addf %26, %29 : vector<32x128xf32>
      %cst_11 = arith.constant 0.000000e+00 : f32
      %31 = vector.broadcast %cst_11 : f32 to vector<32x128xf32>
      %32 = arith.cmpf oge, %3, %31 : vector<32x128xf32>
      %cst_12 = arith.constant 1.000000e+00 : f32
      %33 = vector.broadcast %cst_12 : f32 to vector<32x128xf32>
      %34 = arith.select %32, %33, %18 : vector<32x128xi1>, vector<32x128xf32>
      %35 = arith.mulf %34, %22 : vector<32x128xf32>
      %c0_13 = arith.constant 0 : index
      %c0_14 = arith.constant 0 : index
      %36 = vector.load %arg4[%c0_13, %c0_14] : memref<32x128xf32, #tpu.memory_space<vmem>>, vector<8x128xf32>
      %37 = vector.shape_cast %30 : vector<32x128xf32> to vector<4x8x128xf32>
      %cst_15 = arith.constant dense<0.000000e+00> : vector<8x128xf32>
      %38 = vector.multi_reduction <add>, %37, %cst_15 [0] : vector<4x8x128xf32> to vector<8x128xf32>
      %39 = arith.addf %36, %38 : vector<8x128xf32>
      %c0_16 = arith.constant 0 : index
      %c0_17 = arith.constant 0 : index
      %40 = vector.load %arg4[%c0_16, %c0_17] : memref<32x128xf32, #tpu.memory_space<vmem>>, vector<8x128xf32>
      tpu.vector_store %arg4[%c0_16, %c0_17], %39 {strides = array<i32>} : memref<32x128xf32, #tpu.memory_space<vmem>>, vector<8x128xf32>,
      %c8 = arith.constant 8 : index
      %c0_18 = arith.constant 0 : index
      %41 = vector.load %arg4[%c8, %c0_18] : memref<32x128xf32, #tpu.memory_space<vmem>>, vector<8x128xf32>
      %42 = vector.shape_cast %35 : vector<32x128xf32> to vector<4x8x128xf32>
      %cst_19 = arith.constant dense<0.000000e+00> : vector<8x128xf32>
      %43 = vector.multi_reduction <add>, %42, %cst_19 [0] : vector<4x8x128xf32> to vector<8x128xf32>
      %44 = arith.addf %41, %43 : vector<8x128xf32>
      %c8_20 = arith.constant 8 : index
      %c0_21 = arith.constant 0 : index
      %45 = vector.load %arg4[%c8_20, %c0_21] : memref<32x128xf32, #tpu.memory_space<vmem>>, vector<8x128xf32>
      tpu.vector_store %arg4[%c8_20, %c0_21], %44 {strides = array<i32>} : memref<32x128xf32, #tpu.memory_space<vmem>>, vector<8x128xf32>,
      %c16 = arith.constant 16 : index
      %c0_22 = arith.constant 0 : index
      %46 = vector.load %arg4[%c16, %c0_22] : memref<32x128xf32, #tpu.memory_space<vmem>>, vector<8x128xf32>
      %47 = vector.shape_cast %4 : vector<32x128xf32> to vector<4x8x128xf32>
      %cst_23 = arith.constant dense<0.000000e+00> : vector<8x128xf32>
      %48 = vector.multi_reduction <add>, %47, %cst_23 [0] : vector<4x8x128xf32> to vector<8x128xf32>
      %49 = arith.addf %46, %48 : vector<8x128xf32>
      %c16_24 = arith.constant 16 : index
      %c0_25 = arith.constant 0 : index
      %50 = vector.load %arg4[%c16_24, %c0_25] : memref<32x128xf32, #tpu.memory_space<vmem>>, vector<8x128xf32>
      tpu.vector_store %arg4[%c16_24, %c0_25], %49 {strides = array<i32>} : memref<32x128xf32, #tpu.memory_space<vmem>>, vector<8x128xf32>,
      %c24 = arith.constant 24 : index
      %c0_26 = arith.constant 0 : index
      %51 = vector.load %arg4[%c24, %c0_26] : memref<32x128xf32, #tpu.memory_space<vmem>>, vector<8x128xf32>
      %52 = arith.mulf %35, %4 : vector<32x128xf32>
      %53 = vector.shape_cast %52 : vector<32x128xf32> to vector<4x8x128xf32>
      %cst_27 = arith.constant dense<0.000000e+00> : vector<8x128xf32>
      %54 = vector.multi_reduction <add>, %53, %cst_27 [0] : vector<4x8x128xf32> to vector<8x128xf32>
      %55 = arith.addf %51, %54 : vector<8x128xf32>
      %c24_28 = arith.constant 24 : index
      %c0_29 = arith.constant 0 : index
      %56 = vector.load %arg4[%c24_28, %c0_29] : memref<32x128xf32, #tpu.memory_space<vmem>>, vector<8x128xf32>
      tpu.vector_store %arg4[%c24_28, %c0_29], %55 {strides = array<i32>} : memref<32x128xf32, #tpu.memory_space<vmem>>, vector<8x128xf32>,
    } else {
    }
    return
  }
  func.func @transform_0(%arg0: i32, %arg1: i32) -> (i32, i32) {
    %c1_i32 = arith.constant 1 : i32
    %0 = arith.muli %arg0, %c1_i32 : i32
    %1 = arith.addi %0, %arg1 : i32
    %c0_i32 = arith.constant 0 : i32
    %c0_i32_0 = arith.constant 0 : i32
    return %1, %c0_i32 : i32, i32
  }
  func.func @transform_1(%arg0: i32, %arg1: i32) -> (i32, i32) {
    %c1_i32 = arith.constant 1 : i32
    %0 = arith.muli %arg0, %c1_i32 : i32
    %1 = arith.addi %0, %arg1 : i32
    %c0_i32 = arith.constant 0 : i32
    %c0_i32_0 = arith.constant 0 : i32
    return %1, %c0_i32 : i32, i32
  }
  func.func @transform_2(%arg0: i32, %arg1: i32) -> (i32, i32) {
    %c0_i32 = arith.constant 0 : i32
    %c0_i32_0 = arith.constant 0 : i32
    return %arg0, %c0_i32 : i32, i32
  }
}

</mosaic_0001>

<bundles_post_ra>
// kernel: tpu_custom_call.1
= control target key start
LH: loop header
LB: loop body
LE: loop exit
PB: predicated region body
PF: predicated region fallthrough
CT: control target
= control target key end

     0   :  { %7 = vsyncpa [#allocation3], 0  ;;  %s475_s0 = inlined_call_operand.hbm [shape: f32[16,128], index: 0, kind: input, shape index: {}]   ;;  %s476_s1 = inlined_call_operand.hbm [shape: f32[16,128], index: 1, kind: input, shape index: {}]   ;;  %s477_s2 = inlined_call_operand.hbm [shape: f32[32,128], index: 2, kind: output, shape index: {}]  }
   0x1   :  { %8 = vsyncpa [#allocation6], 0 }
   0x2   :  { %9 = vsyncpa [#allocation4], 0 }
   0x3   :  { %18 = vsyncadd [#allocation3], 256  ;;  %s410_s9 = smov [#allocation2]   ;;  %s338_s13 = scalar_lea.hbm %s475_s0, 256 }
   0x4   :  { %s23_s10 = sshll.u32 %s410_s9, 4  ;;  %p339_p0 = scmp.ne.s32.totalorder %s475_s0, %s338_s13  ;;  %s24_s10 = int_to_ptr.vmem [resolvable:$true] %s23_s10 }
   0x5   :  { %p342_p1 = scmp.lt.u32.totalorder %s338_s13, %s475_s0 }
   0x7   :  { %p344_p2 = pnand %p342_p1, %p339_p0 }
   0x9   :  { %347 = shalt.err (!%p344_p2)
}
   0xa   :  { %s348_s18 = scalar_lea.vmem %s24_s10, 256  ;;  %s352_s19 = scalar_lea.vmem %s24_s10, 512 }
   0xb   :  { %p349_p3 = scmp.ne.s32.totalorder %s24_s10, %s348_s18  ;;  %p353_p4 = scmp.lt.s32.totalorder %s24_s10, %s24_s10 }
   0xc   :  { %p354_p5 = scmp.lt.s32.totalorder %s352_s19, %s348_s18 }
   0xe   :  { %p355_p6 = por %p354_p5, %p353_p4 }
  0x10   :  { %p356_p7 = pnand %p355_p6, %p349_p3 }
  0x12   :  { %359 = shalt.err (!%p356_p7)
}
  0x13   :  { %s411_s20 = smov 128   ;;  %s412_s21 = smov 8  }
  0x14   :  { %29 = dma.hbm_to_vmem [thread:$0]  %s475_s0, 256, %s24_s10, [#allocation3], %s411_s20, %s411_s20, %s412_s21  }
  0x15   :  { %38 = vsyncadd [#allocation6], 256  ;;  %s413_s24 = smov [#allocation5]   ;;  %s360_s28 = scalar_lea.hbm %s476_s1, 256 }
  0x16   :  { %s43_s25 = sshll.u32 %s413_s24, 4  ;;  %p361_p8 = scmp.ne.s32.totalorder %s476_s1, %s360_s28  ;;  %s44_s25 = int_to_ptr.vmem [resolvable:$true] %s43_s25 }
  0x17   :  { %p364_p9 = scmp.lt.u32.totalorder %s360_s28, %s476_s1 }
  0x19   :  { %p366_p10 = pnand %p364_p9, %p361_p8 }
  0x1b   :  { %369 = shalt.err (!%p366_p10)
}
  0x1c   :  { %s370_s5 = scalar_lea.vmem %s44_s25, 256  ;;  %s374_s0 = scalar_lea.vmem %s44_s25, 512 }
  0x1d   :  { %p371_p11 = scmp.ne.s32.totalorder %s44_s25, %s370_s5  ;;  %p375_p12 = scmp.lt.s32.totalorder %s44_s25, %s44_s25 }
  0x1e   :  { %p376_p13 = scmp.lt.s32.totalorder %s374_s0, %s370_s5 }
  0x20   :  { %p377_p0 = por %p376_p13, %p375_p12 }
  0x22   :  { %p378_p1 = pnand %p377_p0, %p371_p11 }
  0x24   :  { %381 = shalt.err (!%p378_p1)
}
  0x25   :  { %49 = dma.hbm_to_vmem [thread:$0]  %s476_s1, 256, %s44_s25, [#allocation6], %s411_s20, %s411_s20, %s412_s21  }
  0x26   :  { %404 = dma.done.wait [#allocation3], 512  }
  0x27   :  { %405 = vsyncadd [#allocation3], 4294966784 }
  0x28   :  { %406 = dma.done.wait [#allocation6], 512  }
  0x29   :  { %407 = vsyncadd [#allocation6], 4294966784  ;;  %v72_v0 = vld [vmem:[#allocation2] sm:$0xff]  ;;  %v73_v1 = vld [vmem:[#allocation2 + $0x8] sm:$0xff]  ;;  %s414_s1 = smov [#allocation7]  }
  0x2a   :  { %v87_v2 = vand.u32 2147483647, %v72_v0  ;;  %v88_v3 = vand.u32 2147483647, %v73_v1  ;;  %v76_v4 = vld [vmem:[#allocation5] sm:$0xff]  ;;  %v77_v5 = vld [vmem:[#allocation5 + $0x8] sm:$0xff] }
  0x2b   :  { %v191_v8 = vadd.f32 %v77_v5, %v76_v4  ;;  %vm139_vm0 = vcmp.ge.f32.partialorder %v72_v0, 0.0  ;;  %vm140_vm1 = vcmp.ge.f32.partialorder %v73_v1, 0.0  ;;  %v115_v15 = vmax.f32 %v72_v0, 0.0  ;;  %s307_s8 = sshll.u32 %s414_s1, 4  ;;  %s308_s8 = int_to_ptr.vmem [resolvable:$true] %s307_s8 }
  0x2c   :  { %v91_v6 = vsub.f32 0.0, %v87_v2  ;;  %v92_v7 = vsub.f32 0.0, %v88_v3  ;;  %v119_v16 = vmul.f32 %v76_v4, %v72_v0  ;;  %v116_v17 = vmax.f32 %v73_v1, 0.0  ;;  %s382_s9 = scalar_lea.vmem %s308_s8, 512  ;;  %p387_p3 = scmp.lt.s32.totalorder %s308_s8, %s308_s8 }
  0x2d   :  { %195 = vst [vmem:[#allocation7 + $0x10] sm:$0xff] %v191_v8  ;;  %v120_v18 = vmul.f32 %v77_v5, %v73_v1  ;;  %p383_p2 = scmp.ne.s32.totalorder %s308_s8, %s382_s9  ;;  %p388_p4 = scmp.lt.s32.totalorder %s382_s9, %s382_s9 }
  0x2e   :  { %v95_v9 = vmul.f32 1.442695, %v91_v6  ;;  %v97_v10 = vmul.f32 1.442695, %v92_v7  ;;  %v123_v23 = vsub.f32 %v115_v15, %v119_v16 }
  0x2f   :  { %v124_v26 = vsub.f32 %v116_v17, %v120_v18  ;;  %p389_p5 = por %p388_p4, %p387_p3 }
  0x30   :  { %326 = vpow2.f32 %v95_v9 }
  0x31   :  { %328 = vpow2.f32 %v97_v10  ;;  %p390_p6 = pnand %p389_p5, %p383_p2 }
  0x3a   :  { %v327_v11 = vpop.eup %326 }
  0x3b   :  { %v329_v12 = vpop.eup %328  ;;  %v103_v13 = vadd.f32 1.0, %v327_v11  ;;  %v143_v19 = vsel %vm139_vm0, 1.0, %v327_v11 }
  0x3c   :  { %v104_v14 = vadd.f32 1.0, %v329_v12  ;;  %v144_v20 = vsel %vm140_vm1, 1.0, %v329_v12 }
  0x3d   :  { %330 = vrcp.f32 %v103_v13 }
  0x3e   :  { %332 = vrcp.f32 %v104_v14 }
  0x3f   :  { %334 = vlog2.f32 %v103_v13 }
  0x40   :  { %336 = vlog2.f32 %v104_v14 }
  0x47   :  { %v331_v21 = vpop.eup %330 }
  0x48   :  { %v333_v22 = vpop.eup %332  ;;  %v147_v24 = vmul.f32 %v331_v21, %v143_v19 }
  0x49   :  { %v335_v25 = vpop.eup %334  ;;  %v148_v27 = vmul.f32 %v333_v22, %v144_v20 }
  0x4a   :  { %v337_v28 = vpop.eup %336  ;;  %v128_v29 = vmul.f32 0.6931472, %v335_v25  ;;  %v197_v30 = vmul.f32 %v147_v24, %v76_v4 }
  0x4b   :  { %v130_v31 = vmul.f32 0.6931472, %v337_v28  ;;  %v185_v32 = vadd.f32 %v148_v27, %v147_v24  ;;  %v198_v33 = vmul.f32 %v148_v27, %v77_v5 }
  0x4c   :  { %v135_v34 = vadd.f32 %v128_v29, %v123_v23 }
  0x4d   :  { %v136_v35 = vadd.f32 %v130_v31, %v124_v26  ;;  %v201_v36 = vadd.f32 %v198_v33, %v197_v30  ;;  %189 = vst [vmem:[#allocation7 + $0x8] sm:$0xff] %v185_v32 }
  0x4f   :  { %v179_v37 = vadd.f32 %v136_v35, %v135_v34  ;;  %205 = vst [vmem:[#allocation7 + $0x18] sm:$0xff] %v201_v36 }
  0x51   :  { %183 = vst [vmem:[#allocation7] sm:$0xff] %v179_v37 }
  0x52   :  { %393 = shalt.err (!%p390_p6)
}
  0x53   :  { %s394_s12 = scalar_lea.hbm %s477_s2, 512 }
  0x54   :  { %p395_p7 = scmp.ne.s32.totalorder %s477_s2, %s394_s12  ;;  %p398_p8 = scmp.lt.u32.totalorder %s394_s12, %s477_s2 }
  0x56   :  { %p400_p9 = pnand %p398_p8, %p395_p7 }
  0x58   :  { %403 = shalt.err (!%p400_p9)
}
  0x59   :  { %313 = dma.vmem_to_hbm [thread:$0]  %s308_s8, 512, %s477_s2, [#allocation4], %s411_s20, %s411_s20, %s412_s21  }
  0x5a   :  { %408 = dma.done.wait [#allocation4], 512  }
  0x5b   :  { %409 = vsyncadd [#allocation4], 4294966784 }
  0x5c   :  { %317 = vsyncpa [#allocation3], 1 }
  0x5d   :  { %318 = vsyncpa [#allocation6], 1 }
  0x5e   :  { %319 = vsyncpa [#allocation4], 1 }

</bundles_post_ra>
